<compile_context>
chip_gen: v7x
topology: tpu7x:2x2x1
jax: 0.10.0
libtpu: 0.0.40
codegen_flags: <defaults>
</compile_context>

<pallas_src>
import functools

import jax
import jax.numpy as jnp
from jax.experimental import pallas as pl
from jax.experimental.pallas import tpu as pltpu


def _round_up(x: int, m: int) -> int:
    return ((x + m - 1) // m) * m


# ---------------------------------------------------------------------------
# Fused kernel: one row-tile of x through every layer, only final result stored
# ---------------------------------------------------------------------------
def _fused_mlp_kernel(x_ref, *refs, num_layers: int, compute_dtype):
    o_ref = refs[-1]
    wb_refs = refs[:-1]          # [w0, b0, w1, b1, ...] all resident in VMEM

    h = x_ref[...].astype(compute_dtype)          # cast in VMEM, not in HBM
    for i in range(num_layers):
        w = wb_refs[2 * i][...]                   # (in_i, out_i), compute_dtype
        b = wb_refs[2 * i + 1][...]               # (1, out_i), f32
        y = jnp.dot(h, w, preferred_element_type=jnp.float32)  # MXU, f32 acc
        y = y + b                                               # f32 bias
        if i < num_layers - 1:
            y = jnp.maximum(y, 0.0)                             # ReLU (f32)
            h = y.astype(compute_dtype)                         # back to MXU dtype
        else:
            h = y
    o_ref[...] = h.astype(o_ref.dtype)


# ---------------------------------------------------------------------------
# Param prep (done once, outside the forward pass)
# ---------------------------------------------------------------------------
def init_mlp_params(key, input_channels, hidden_channels, output_channels):
    """Deterministic init mirroring torch.nn.Linear.reset_parameters():
    weight, bias ~ U(-1/sqrt(fan_in), 1/sqrt(fan_in)). Weight stored (out, in)
    like PyTorch."""
    ic = [input_channels] + list(hidden_channels)
    oc = list(hidden_channels) + [output_channels]
    params = []
    for fan_in, fan_out in zip(ic, oc):
        key, kw, kb = jax.random.split(key, 3)
        bound = 1.0 / jnp.sqrt(jnp.asarray(fan_in, jnp.float32))
        w = jax.random.uniform(kw, (fan_out, fan_in), jnp.float32, -bound, bound)
        b = jax.random.uniform(kb, (fan_out,), jnp.float32, -bound, bound)
        params.append((w, b))
    return params


def prepare_mlp_params(params, compute_dtype=jnp.float32):
    """Pre-transpose weights to (in, out) in compute_dtype and reshape biases
    to (1, out) f32.  No padding.  Done ONCE outside the forward."""
    prepared = []
    for w, b in params:
        prepared.append((jnp.asarray(w.T, compute_dtype),
                         jnp.asarray(b, jnp.float32).reshape(1, -1)))
    return prepared


# ---------------------------------------------------------------------------
# Tile selection: dtype-aware sublane rounding + VMEM budget + 2-TC split
# ---------------------------------------------------------------------------
def _pick_tile_n(n, c_in, act_widths, in_itemsize, out_itemsize,
                 compute_itemsize, tile_n, vmem_budget_bytes=12 << 20):
    # Sublane packing: 8 rows for 4-byte, 16 for 2-byte, 32 for 1-byte types.
    sub = max(8 * (4 // in_itemsize), 8 * (4 // out_itemsize),
              8 * (4 // compute_itemsize), 8)
    c_out = act_widths[-1]
    # Rough per-row VMEM bytes: double-buffered input + output tiles (pipeline)
    # plus f32 intermediates kept live through the fused layer chain.
    per_row = (2 * c_in * in_itemsize + 2 * c_out * out_itemsize
               + 4 * (c_in + sum(act_widths)))
    vmem_cap = max(sub, (vmem_budget_bytes // per_row) // sub * sub)
    tile_n = min(tile_n, vmem_cap, _round_up(n, sub))
    # Feed both TensorCores on v7x: if there's enough work but it would all
    # land in one tile, split it into two.
    if n > 1024 and -(-n // tile_n) < 2:
        tile_n = -(-n // 2)
    return _round_up(tile_n, sub)


# ---------------------------------------------------------------------------
# Forward: single fused pallas_call, grid over row tiles
# ---------------------------------------------------------------------------
def mlp_forward(x, prepared_params, output_channels, *, tile_n=8192,
                compute_dtype=jnp.float32, out_dtype=jnp.float32):
    n, c_in = x.shape
    num_layers = len(prepared_params)
    assert prepared_params[0][0].shape[0] == c_in
    assert prepared_params[-1][0].shape[1] == output_channels

    act_widths = [w.shape[1] for w, _ in prepared_params]
    tile_n = _pick_tile_n(
        n, c_in, act_widths,
        jnp.dtype(x.dtype).itemsize, jnp.dtype(out_dtype).itemsize,
        jnp.dtype(compute_dtype).itemsize, tile_n)

    grid = (pl.cdiv(n, tile_n),)   # partial last block: OOB output rows masked

    # Input at its TRUE width (last block dim == full array dim -> legal).
    in_specs = [pl.BlockSpec((tile_n, c_in), lambda i: (i, 0))]
    flat_params = []
    for w_t, b_p in prepared_params:
        # Constant block index -> weights/biases loaded once, stay resident in
        # VMEM across the whole row grid.
        in_specs.append(pl.BlockSpec(w_t.shape, lambda i: (0, 0)))
        in_specs.append(pl.BlockSpec(b_p.shape, lambda i: (0, 0)))
        flat_params.extend([w_t, b_p])

    kernel = functools.partial(_fused_mlp_kernel, num_layers=num_layers,
                               compute_dtype=compute_dtype)

    # Output at its TRUE width and TRUE row count -> no wrapper slice pass.
    return pl.pallas_call(
        kernel,
        out_shape=jax.ShapeDtypeStruct((n, output_channels), out_dtype),
        grid=grid,
        in_specs=in_specs,
        out_specs=pl.BlockSpec((tile_n, output_channels), lambda i: (i, 0)),
        compiler_params=pltpu.CompilerParams(
            dimension_semantics=("parallel",),  # shard row tiles across TCs (v7x)
        ),
    )(x, *flat_params)


# ---------------------------------------------------------------------------
# Pure-JAX reference (matches the PyTorch MLP forward with norm_layer=None)
# ---------------------------------------------------------------------------
def mlp_reference(x, params):
    n_layers = len(params)
    for i, (w, b) in enumerate(params):
        x = x @ w.T + b
        if i < n_layers - 1:
            x = jnp.maximum(x, 0.0)
    return x


if __name__ == "__main__":
    key = jax.random.PRNGKey(0)

    input_channels = 16
    hidden_channels = [32, 32]
    output_channels = 8

    k_params, k_x, k_x2, k_x3 = jax.random.split(key, 4)
    params = init_mlp_params(k_params, input_channels, hidden_channels,
                             output_channels)
    prepared_f32 = prepare_mlp_params(params, compute_dtype=jnp.float32)

    # --- small batch, single tile, f32 (exact check) ---
    x = jax.random.normal(k_x, (8, input_channels), jnp.float32)
    y = jax.block_until_ready(
        mlp_forward(x, prepared_f32, output_channels))
    assert y.shape == (8, output_channels)
    assert jnp.allclose(y, mlp_reference(x, params), atol=1e-5, rtol=1e-5)

    # --- multi-tile + partial last block (rows not a tile multiple) ---
    x2 = jax.random.normal(k_x2, (40, input_channels), jnp.float32)
    y2 = jax.block_until_ready(
        mlp_forward(x2, prepared_f32, output_channels, tile_n=16))
    assert y2.shape == (40, output_channels)
    assert jnp.allclose(y2, mlp_reference(x2, params), atol=1e-5, rtol=1e-5)

    # --- larger batch: exercises the default tile pick / >=2-tile split ---
    x3 = jax.random.normal(k_x3, (3000, input_channels), jnp.float32)
    y3 = jax.block_until_ready(
        mlp_forward(x3, prepared_f32, output_channels))
    assert y3.shape == (3000, output_channels)
    assert jnp.allclose(y3, mlp_reference(x3, params), atol=1e-4, rtol=1e-4)

    # --- bf16 compute path for v6e/v7x (f32 accumulation, f32 elementwise) ---
    prepared_bf16 = prepare_mlp_params(params, compute_dtype=jnp.bfloat16)
    y_bf16 = jax.block_until_ready(
        mlp_forward(x, prepared_bf16, output_channels,
                    compute_dtype=jnp.bfloat16))
    assert y_bf16.shape == (8, output_channels)
    assert jnp.allclose(y_bf16, mlp_reference(x, params), atol=1e-1, rtol=1e-1)

    print("KERNEL_OK")
</pallas_src>

<mosaic_0001>
module attributes {stable_mosaic.version = 11 : i64} {
  func.func @_fused_mlp_kernel(%arg0: i32, %arg1: memref<8x16xf32, #tpu.memory_space<vmem>>, %arg2: memref<16x32xf32, #tpu.memory_space<vmem>>, %arg3: memref<1x32xf32, #tpu.memory_space<vmem>>, %arg4: memref<32x32xf32, #tpu.memory_space<vmem>>, %arg5: memref<1x32xf32, #tpu.memory_space<vmem>>, %arg6: memref<32x8xf32, #tpu.memory_space<vmem>>, %arg7: memref<1x8xf32, #tpu.memory_space<vmem>>, %arg8: memref<8x8xf32, #tpu.memory_space<vmem>>) attributes {dimension_semantics = [#tpu.dimension_semantics<parallel>], iteration_bounds = array<i64: 1>, scalar_prefetch = 0 : i64, scratch_operands = 0 : i64, tpu.core_type = #tpu.core_type<tc>, window_params = [{transform_indices = @transform_0, window_bounds = array<i64: 8, 16>}, {pipeline_mode = #tpu.pipeline_mode<synchronous>, transform_indices = @transform_1, window_bounds = array<i64: 16, 32>}, {pipeline_mode = #tpu.pipeline_mode<synchronous>, transform_indices = @transform_2, window_bounds = array<i64: 1, 32>}, {pipeline_mode = #tpu.pipeline_mode<synchronous>, transform_indices = @transform_3, window_bounds = array<i64: 32, 32>}, {pipeline_mode = #tpu.pipeline_mode<synchronous>, transform_indices = @transform_4, window_bounds = array<i64: 1, 32>}, {pipeline_mode = #tpu.pipeline_mode<synchronous>, transform_indices = @transform_5, window_bounds = array<i64: 32, 8>}, {pipeline_mode = #tpu.pipeline_mode<synchronous>, transform_indices = @transform_6, window_bounds = array<i64: 1, 8>}, {transform_indices = @transform_7, window_bounds = array<i64: 8, 8>}]} {
    %c0 = arith.constant 0 : index
    %c0_0 = arith.constant 0 : index
    %0 = vector.load %arg1[%c0, %c0_0] : memref<8x16xf32, #tpu.memory_space<vmem>>, vector<8x16xf32>
    %c0_1 = arith.constant 0 : index
    %c0_2 = arith.constant 0 : index
    %1 = vector.load %arg2[%c0_1, %c0_2] : memref<16x32xf32, #tpu.memory_space<vmem>>, vector<16x32xf32>
    %c0_3 = arith.constant 0 : index
    %c0_4 = arith.constant 0 : index
    %2 = vector.load %arg3[%c0_3, %c0_4] : memref<1x32xf32, #tpu.memory_space<vmem>>, vector<1x32xf32>
    %cst = arith.constant dense<0.000000e+00> : vector<8x32xf32>
    %3 = tpu.matmul %0, %1, %cst {dimension_numbers = #tpu.dot_dimension_numbers<[1], [0], [0], [1], [0, 0, 1, 1], [], []>} : vector<8x16xf32>, vector<16x32xf32>, vector<8x32xf32> -> vector<8x32xf32>
    %4 = vector.broadcast %2 : vector<1x32xf32> to vector<8x32xf32>
    %5 = arith.addf %3, %4 : vector<8x32xf32>
    %cst_5 = arith.constant 0.000000e+00 : f32
    %6 = vector.broadcast %cst_5 : f32 to vector<8x32xf32>
    %7 = arith.maximumf %5, %6 : vector<8x32xf32>
    %c0_6 = arith.constant 0 : index
    %c0_7 = arith.constant 0 : index
    %8 = vector.load %arg4[%c0_6, %c0_7] : memref<32x32xf32, #tpu.memory_space<vmem>>, vector<32x32xf32>
    %c0_8 = arith.constant 0 : index
    %c0_9 = arith.constant 0 : index
    %9 = vector.load %arg5[%c0_8, %c0_9] : memref<1x32xf32, #tpu.memory_space<vmem>>, vector<1x32xf32>
    %cst_10 = arith.constant dense<0.000000e+00> : vector<8x32xf32>
    %10 = tpu.matmul %7, %8, %cst_10 {dimension_numbers = #tpu.dot_dimension_numbers<[1], [0], [0], [1], [0, 0, 1, 1], [], []>} : vector<8x32xf32>, vector<32x32xf32>, vector<8x32xf32> -> vector<8x32xf32>
    %11 = vector.broadcast %9 : vector<1x32xf32> to vector<8x32xf32>
    %12 = arith.addf %10, %11 : vector<8x32xf32>
    %cst_11 = arith.constant 0.000000e+00 : f32
    %13 = vector.broadcast %cst_11 : f32 to vector<8x32xf32>
    %14 = arith.maximumf %12, %13 : vector<8x32xf32>
    %c0_12 = arith.constant 0 : index
    %c0_13 = arith.constant 0 : index
    %15 = vector.load %arg6[%c0_12, %c0_13] : memref<32x8xf32, #tpu.memory_space<vmem>>, vector<32x8xf32>
    %c0_14 = arith.constant 0 : index
    %c0_15 = arith.constant 0 : index
    %16 = vector.load %arg7[%c0_14, %c0_15] : memref<1x8xf32, #tpu.memory_space<vmem>>, vector<1x8xf32>
    %cst_16 = arith.constant dense<0.000000e+00> : vector<8x8xf32>
    %17 = tpu.matmul %14, %15, %cst_16 {dimension_numbers = #tpu.dot_dimension_numbers<[1], [0], [0], [1], [0, 0, 1, 1], [], []>} : vector<8x32xf32>, vector<32x8xf32>, vector<8x8xf32> -> vector<8x8xf32>
    %18 = vector.broadcast %16 : vector<1x8xf32> to vector<8x8xf32>
    %19 = arith.addf %17, %18 : vector<8x8xf32>
    %c0_17 = arith.constant 0 : index
    %c0_18 = arith.constant 0 : index
    %20 = vector.load %arg8[%c0_17, %c0_18] : memref<8x8xf32, #tpu.memory_space<vmem>>, vector<8x8xf32>
    tpu.vector_store %arg8[%c0_17, %c0_18], %19 {strides = array<i32>} : memref<8x8xf32, #tpu.memory_space<vmem>>, vector<8x8xf32>,
    return
  }
  func.func @transform_0(%arg0: i32) -> (i32, i32) {
    %c0_i32 = arith.constant 0 : i32
    %c0_i32_0 = arith.constant 0 : i32
    return %arg0, %c0_i32 : i32, i32
  }
  func.func @transform_1(%arg0: i32) -> (i32, i32) {
    %c0_i32 = arith.constant 0 : i32
    %c0_i32_0 = arith.constant 0 : i32
    %c0_i32_1 = arith.constant 0 : i32
    return %c0_i32, %c0_i32_0 : i32, i32
  }
  func.func @transform_2(%arg0: i32) -> (i32, i32) {
    %c0_i32 = arith.constant 0 : i32
    %c0_i32_0 = arith.constant 0 : i32
    %c0_i32_1 = arith.constant 0 : i32
    return %c0_i32, %c0_i32_0 : i32, i32
  }
  func.func @transform_3(%arg0: i32) -> (i32, i32) {
    %c0_i32 = arith.constant 0 : i32
    %c0_i32_0 = arith.constant 0 : i32
    %c0_i32_1 = arith.constant 0 : i32
    return %c0_i32, %c0_i32_0 : i32, i32
  }
  func.func @transform_4(%arg0: i32) -> (i32, i32) {
    %c0_i32 = arith.constant 0 : i32
    %c0_i32_0 = arith.constant 0 : i32
    %c0_i32_1 = arith.constant 0 : i32
    return %c0_i32, %c0_i32_0 : i32, i32
  }
  func.func @transform_5(%arg0: i32) -> (i32, i32) {
    %c0_i32 = arith.constant 0 : i32
    %c0_i32_0 = arith.constant 0 : i32
    %c0_i32_1 = arith.constant 0 : i32
    return %c0_i32, %c0_i32_0 : i32, i32
  }
  func.func @transform_6(%arg0: i32) -> (i32, i32) {
    %c0_i32 = arith.constant 0 : i32
    %c0_i32_0 = arith.constant 0 : i32
    %c0_i32_1 = arith.constant 0 : i32
    return %c0_i32, %c0_i32_0 : i32, i32
  }
  func.func @transform_7(%arg0: i32) -> (i32, i32) {
    %c0_i32 = arith.constant 0 : i32
    %c0_i32_0 = arith.constant 0 : i32
    return %arg0, %c0_i32 : i32, i32
  }
}

</mosaic_0001>

<bundles_post_ra>
// kernel: tpu_custom_call.1
= control target key start
LH: loop header
LB: loop body
LE: loop exit
PB: predicated region body
PF: predicated region fallthrough
CT: control target
= control target key end

     0   :  { %12 = vsyncpa [#allocation3], 0  ;;  %s538_s0 = inlined_call_operand.hbm [shape: f32[8,16], index: 0, kind: input, shape index: {}]   ;;  %s539_s1 = inlined_call_operand.vmem [shape: f32[16,32], index: 1, kind: input, shape index: {}]   ;;  %s540_s2 = inlined_call_operand.vmem [shape: f32[1,32], index: 2, kind: input, shape index: {}]   ;;  %s541_s3 = inlined_call_operand.vmem [shape: f32[32,32], index: 3, kind: input, shape index: {}]   ;;  %s542_s4 = inlined_call_operand.vmem [shape: f32[1,32], index: 4, kind: input, shape index: {}]   ;;  %s543_s5 = inlined_call_operand.vmem [shape: f32[32,8], index: 5, kind: input, shape index: {}]   ;;  %s544_s6 = inlined_call_operand.vmem [shape: f32[1,8], index: 6, kind: input, shape index: {}]   ;;  %s545_s7 = inlined_call_operand.hbm [shape: f32[8,8], index: 7, kind: output, shape index: {}]  }
   0x1   :  { %13 = vsyncpa [#allocation4], 0  ;;  %s427_s24 = smov [#allocation2]   ;;  %s379_s28 = scalar_lea.hbm %s538_s0, 128 }
   0x2   :  { %s20_s25 = sshll.u32 %s427_s24, 4  ;;  %p380_p0 = scmp.ne.s32.totalorder %s538_s0, %s379_s28  ;;  %s21_s25 = int_to_ptr.vmem [resolvable:$true] %s20_s25 }
   0x3   :  { %p383_p1 = scmp.lt.u32.totalorder %s379_s28, %s538_s0 }
   0x5   :  { %p385_p2 = pnand %p383_p1, %p380_p0 }
   0x7   :  { %388 = shalt.err (!%p385_p2)
}
   0x8   :  { %s389_s10 = scalar_lea.vmem %s21_s25, 128  ;;  %p394_p4 = scmp.lt.s32.totalorder %s21_s25, %s21_s25 }
   0x9   :  { %p390_p3 = scmp.ne.s32.totalorder %s21_s25, %s389_s10  ;;  %p395_p5 = scmp.lt.s32.totalorder %s389_s10, %s389_s10 }
   0xb   :  { %p396_p6 = por %p395_p5, %p394_p4 }
   0xd   :  { %p397_p7 = pnand %p396_p6, %p390_p3 }
   0xf   :  { %400 = shalt.err (!%p397_p7)
}
  0x10   :  { %23 = dma.hbm_to_vmem [thread:$0]  %s538_s0, 128, %s21_s25, [#allocation3]  }
  0x11   :  { %423 = dma.done.wait [#allocation3], 128  }
  0x12   :  { %424 = vsyncadd [#allocation3], 4294967168  ;;  %v428_v0 = vmov 0.0|0.0   ;;  %vm429_vm0 = vmmov 0   ;;  %v430_v1 = vmov 0.0   ;;  %v40_v2 = vld [vmem:[%s539_s1] sm:$0xff] }
  0x13   :  { %359 = vmatprep.subr.bf16.mxu0 %v428_v0  ;;  %334 = vmatprep.mubr.msk.f32.mxu0 %vm429_vm0, %v430_v1  ;;  %v41_v3 = vld [vmem:[%s539_s1 + $0x8] sm:$0xff]  ;;  %v124_v5 = vld [vmem:[%s541_s3] sm:$0xff]  ;;  %vm49_vm1 = vcmask 130048   ;;  %v126_v9 = vld [vmem:[%s541_s3 + $0x10] sm:$0xff]  ;;  %vm135_vm2 = vcmask 261120   ;;  %s431_s12 = smov [#allocation5]  }
  0x14   :  { %362 = vmatprep.subr.bf16.mxu1 %v428_v0  ;;  %345 = vmatprep.mubr.msk.f32.mxu1 %vm429_vm0, %v430_v1  ;;  %v360_v4 = vpack.c.bf16 %v41_v3, %v40_v2  ;;  %v125_v6 = vld [vmem:[%s541_s3 + $0x8] sm:$0xff]  ;;  %v39_v8 = vld [vmem:[#allocation2] sm:$0xff]  ;;  %v127_v10 = vld [vmem:[%s541_s3 + $0x18] sm:$0xff]  ;;  %s302_s13 = sshll.u32 %s431_s12, 4  ;;  %vm294_vm3 = vcmask 64512   ;;  %s303_s13 = int_to_ptr.vmem [resolvable:$true] %s302_s13 }
  0x15   :  { %v363_v7 = vpack.c.bf16 %v125_v6, %v124_v5  ;;  %v366_v11 = vpack.c.bf16 %v127_v10, %v126_v9  ;;  %v210_v12 = vld [vmem:[%s543_s5] sm:$0xff]  ;;  %v211_v13 = vld [vmem:[%s543_s5 + $0x8] sm:$0xff]  ;;  %v212_v20 = vld [vmem:[%s543_s5 + $0x10] sm:$0xff]  ;;  %p406_p9 = scmp.lt.s32.totalorder %s303_s13, %s303_s13 }
  0x16   :  { %361 = vmatpush3.bf16.msra.mxu0 %v360_v4  ;;  %v369_v14 = vpack.c.bf16 %v211_v13, %v210_v12  ;;  %v311_v15 = vld [vmem:[%s540_s2] ss:$0 sm:$0xff]  ;;  %v213_v21 = vld [vmem:[%s543_s5 + $0x18] sm:$0xff]  ;;  %s401_s5 = scalar_lea.vmem %s303_s13, 128 }
  0x17   :  { %364 = vmatpush3.bf16.msra.mxu1 %v363_v7  ;;  %368 = vmatprep.subr.bf16.mxu0 %v428_v0  ;;  %v372_v22 = vpack.c.bf16 %v213_v21, %v212_v20  ;;  %v313_v23 = vld [vmem:[%s542_s4] ss:$0 sm:$0xff]  ;;  %p402_p8 = scmp.ne.s32.totalorder %s303_s13, %s401_s5  ;;  %p407_p10 = scmp.lt.s32.totalorder %s401_s5, %s401_s5 }
  0x18   :  { %365 = vmatprep.subr.bf16.mxu1 %v428_v0  ;;  %v315_v28 = vld [vmem:[%s544_s6] ss:$0 sm:$0xff] }
  0x19   :  { %335 = vmatmul.mubr.msk.f32.vlgmr.msra.gmra.mrb[0].mxu0 %vm49_vm1, %v39_v8  ;;  %p408_p11 = por %p407_p10, %p406_p9 }
  0x1a   :  { %356 = vmatprep.mubr.msk.f32.mxu0 %vm429_vm0, %v430_v1  ;;  %370 = vmatpush3.bf16.msra.mxu0 %v369_v14 }
  0x1b   :  { %367 = vmatpush3.bf16.msra.mxu1 %v366_v11  ;;  %371 = vmatprep.subr.bf16.mxu0 %v428_v0  ;;  %p409_p12 = pnand %p408_p11, %p402_p8 }
  0x1e   :  { %373 = vmatpush3.bf16.msra.mxu0 %v372_v22 }
  0xec   :  { %v119_v16 = vpop.f32.mrb[0].mxu0 }
  0xed   :  { %v120_v17 = vadd.f32 %v311_v15, %v119_v16  ;;  %v336_v18 = vpop.f32.mrb[1].mxu0 }
  0xef   :  { %v123_v19 = vmax.f32 %v120_v17, 0.0 }
  0xf1   :  { %346 = vmatmul.mubr.msk.f32.vlgmr.msra.gmra.mrb[0].mxu1 %vm135_vm2, %v123_v19 }
 0x1c4   :  { %v205_v24 = vpop.f32.mrb[0].mxu1 }
 0x1c5   :  { %v206_v25 = vadd.f32 %v313_v23, %v205_v24  ;;  %v347_v26 = vpop.f32.mrb[1].mxu1 }
 0x1c7   :  { %v209_v27 = vmax.f32 %v206_v25, 0.0 }
 0x1c9   :  { %357 = vmatmul.mubr.msk.f32.vlgmr.msra.gmra.mrb[2].mxu0 %vm135_vm2, %v209_v27 }
 0x29c   :  { %v290_v29 = vpop.f32.mrb[2].mxu0 }
 0x29d   :  { %v291_v30 = vadd.f32 %v315_v28, %v290_v29  ;;  %v358_v31 = vpop.f32.mrb[3].mxu0 }
 0x29f   :  { %295 = vst.msk [vmem:[#allocation5] sm:$0xff] %vm294_vm3, %v291_v30 }
 0x2a0   :  { %412 = shalt.err (!%p409_p12)
}
 0x2a1   :  { %s413_s15 = scalar_lea.hbm %s545_s7, 128 }
 0x2a2   :  { %p414_p13 = scmp.ne.s32.totalorder %s545_s7, %s413_s15  ;;  %p417_p0 = scmp.lt.u32.totalorder %s413_s15, %s545_s7 }
 0x2a4   :  { %p419_p1 = pnand %p417_p0, %p414_p13 }
 0x2a6   :  { %422 = shalt.err (!%p419_p1)
}
 0x2a7   :  { %305 = dma.vmem_to_hbm [thread:$0]  %s303_s13, 128, %s545_s7, [#allocation4]  }
 0x2a8   :  { %425 = dma.done.wait [#allocation4], 128  }
 0x2a9   :  { %426 = vsyncadd [#allocation4], 4294967168 }
 0x2aa   :  { %309 = vsyncpa [#allocation3], 1 }
 0x2ab   :  { %310 = vsyncpa [#allocation4], 1 }

</bundles_post_ra>
